<compile_context>
chip_gen: v5e
topology: v5e:2x2
jax: 0.10.0
libtpu: 0.0.40
codegen_flags: <defaults>
</compile_context>

<pallas_src>
import functools

import jax
import jax.numpy as jnp
import numpy as np
from jax.experimental import pallas as pl
from jax.experimental.pallas import tpu as pltpu


def _round_up(x: int, m: int) -> int:
    return ((x + m - 1) // m) * m


def _make_mlp_kernel(depth: int, log_distance: bool):
    """Pallas kernel computing one lane-dense block of the bias table."""

    def kernel(pos_ref, *refs):
        out_ref = refs[-1]
        params = refs[:-1]  # w0,b0, (w_h,b_h)*(depth-1), w_out,b_out

        x = pos_ref[...].astype(jnp.float32)          # (1, TN), N on lanes
        if log_distance:
            x = jnp.sign(x) * jnp.log(jnp.abs(x) + 1.0)

        # Layer 0: Linear(1, dim) + SiLU.  K == 1, so a broadcasted
        # multiply-add is exact and cheaper than an MXU matmul.
        w0 = params[0][...]                           # (dim, 1)
        b0 = params[1][...]                           # (dim, 1)
        h = w0 * x + b0                               # (dim, TN)
        h = h * jax.nn.sigmoid(h)                     # SiLU (EUP sigmoid)

        idx = 2
        for _ in range(depth - 1):                    # hidden Linear(dim, dim) + SiLU
            w = params[idx][...]                      # (dim, dim)  (out, in)
            b = params[idx + 1][...]                  # (dim, 1)
            idx += 2
            h = jnp.dot(w, h, preferred_element_type=jnp.float32) + b
            h = h * jax.nn.sigmoid(h)

        w_out = params[idx][...]                      # (heads_pad, dim)
        b_out = params[idx + 1][...]                  # (heads_pad, 1)
        out = jnp.dot(w_out, h, preferred_element_type=jnp.float32) + b_out
        out_ref[...] = out.astype(out_ref.dtype)      # (heads_pad, TN) lane-dense

    return kernel


def dynamic_position_bias_mlp(pos, params, *, depth, log_distance,
                              max_block_n=4096, out_dtype=jnp.float32):
    """Computes the per-distance bias table as (heads, N) with a Pallas kernel."""
    pos_row = jnp.reshape(pos.astype(jnp.float32), (1, -1))     # (1, N)
    n = pos_row.shape[1]
    heads = params[-1].shape[0]                                  # b_out is (heads, 1)

    # Pad heads up to a sublane multiple so the output store is unmasked.
    heads_pad = _round_up(heads, 8)
    params = list(params)
    if heads_pad != heads:
        params[-2] = jnp.pad(params[-2], ((0, heads_pad - heads), (0, 0)))
        params[-1] = jnp.pad(params[-1], ((0, heads_pad - heads), (0, 0)))

    # Pad N up to a lane-friendly multiple of 128 and pick a block size that
    # divides it (single grid step for typical N, tiled for long context).
    tn = min(max_block_n, _round_up(n, 128))
    n_pad = _round_up(n, tn)
    if n_pad != n:
        pos_row = jnp.pad(pos_row, ((0, 0), (0, n_pad - n)))

    kernel = _make_mlp_kernel(depth, log_distance)

    in_specs = [pl.BlockSpec((1, tn), lambda i: (0, i))]         # pos block on lanes
    for p in params:                                             # weights stay resident
        in_specs.append(pl.BlockSpec(p.shape, lambda i: (0, 0)))
    out_specs = pl.BlockSpec((heads_pad, tn), lambda i: (0, i))

    table = pl.pallas_call(
        kernel,
        out_shape=jax.ShapeDtypeStruct((heads_pad, n_pad), out_dtype),
        grid_spec=pltpu.PrefetchScalarGridSpec(
            num_scalar_prefetch=0,
            grid=(n_pad // tn,),
            in_specs=in_specs,
            out_specs=out_specs,
        ),
        compiler_params=pltpu.CompilerParams(
            dimension_semantics=("parallel",)),
    )(pos_row, *params)

    return table[:heads, :n]                                     # drop padding


def dynamic_position_bias_forward(pos, indices, params, *, depth,
                                  log_distance=False, out_dtype=jnp.float32):
    """Full forward: MLP in Pallas (heads-major table), gather as glue."""
    table = dynamic_position_bias_mlp(
        pos, params, depth=depth, log_distance=log_distance, out_dtype=out_dtype
    )                                                   # (heads, N)
    # Gather along the LAST axis so heads stays leading; only a major-axis
    # swap (heads <-> batch) remains -- last two dims (i, j) are untouched.
    bias = jnp.take(table, indices, axis=1)             # (heads, b, i, j)
    bias = jnp.moveaxis(bias, 0, 1)                     # (b, heads, i, j)
    return bias


def init_params(key, dim, heads, depth):
    """Deterministic synthetic parameters; weights stored as (out, in), biases (out, 1)."""
    params = []
    shapes = [(dim, 1)] + [(dim, dim)] * (depth - 1) + [(heads, dim)]
    for shape in shapes:
        key, kw, kb = jax.random.split(key, 3)
        fan_in = shape[1]
        bound = 1.0 / np.sqrt(fan_in)
        w = jax.random.uniform(kw, shape, jnp.float32, -bound, bound)
        b = jax.random.uniform(kb, (shape[0], 1), jnp.float32, -bound, bound)
        params.extend([w, b])
    return params


def _reference_forward(pos, indices, params, *, depth, log_distance):
    """Plain-JAX reference in the conventional (N, features) layout."""
    x = pos.astype(jnp.float32).reshape(-1, 1)           # (N, 1)
    if log_distance:
        x = jnp.sign(x) * jnp.log(jnp.abs(x) + 1.0)
    idx = 0
    for _ in range(depth):
        w, b = params[idx], params[idx + 1]               # (out, in), (out, 1)
        idx += 2
        x = x @ w.T + b.T
        x = x * jax.nn.sigmoid(x)
    w, b = params[idx], params[idx + 1]
    x = x @ w.T + b.T                                     # (N, heads)
    bias = jnp.take(x, indices, axis=0)                   # (b, i, j, heads)
    return jnp.transpose(bias, (0, 3, 1, 2))              # (b, heads, i, j)


if __name__ == "__main__":
    dim, heads, depth = 32, 4, 2
    batch, seq = 2, 8
    log_distance = False

    key = jax.random.PRNGKey(0)
    params = init_params(key, dim, heads, depth)

    # Relative positions -(seq-1) .. (seq-1), shape (2*seq-1, 1).
    n_rel = 2 * seq - 1
    pos = jnp.arange(-(seq - 1), seq, dtype=jnp.float32).reshape(n_rel, 1)

    # indices[b, i, j] maps (i, j) to its relative-distance row in the table.
    i_idx = jnp.arange(seq)
    rel = i_idx[:, None] - i_idx[None, :] + (seq - 1)     # (seq, seq) in [0, 2*seq-2]
    indices = jnp.broadcast_to(rel, (batch, seq, seq)).astype(jnp.int32)

    fwd = functools.partial(
        dynamic_position_bias_forward, depth=depth, log_distance=log_distance
    )
    bias = jax.block_until_ready(fwd(pos, indices, params))
    assert bias.shape == (batch, heads, seq, seq), bias.shape

    ref = _reference_forward(
        pos, indices, params, depth=depth, log_distance=log_distance
    )
    np.testing.assert_allclose(np.asarray(bias), np.asarray(ref), rtol=1e-5, atol=1e-5)

    print("KERNEL_OK")
</pallas_src>

<mosaic_0001>
module attributes {stable_mosaic.version = 11 : i64} {
  func.func @kernel(%arg0: i32, %arg1: memref<1x128xf32, #tpu.memory_space<vmem>>, %arg2: memref<32x1xf32, #tpu.memory_space<vmem>>, %arg3: memref<32x1xf32, #tpu.memory_space<vmem>>, %arg4: memref<32x32xf32, #tpu.memory_space<vmem>>, %arg5: memref<32x1xf32, #tpu.memory_space<vmem>>, %arg6: memref<8x32xf32, #tpu.memory_space<vmem>>, %arg7: memref<8x1xf32, #tpu.memory_space<vmem>>, %arg8: memref<8x128xf32, #tpu.memory_space<vmem>>) attributes {dimension_semantics = [#tpu.dimension_semantics<parallel>], iteration_bounds = array<i64: 1>, scalar_prefetch = 0 : i64, scratch_operands = 0 : i64, tpu.core_type = #tpu.core_type<tc>, window_params = [{transform_indices = @transform_0, window_bounds = array<i64: 1, 128>}, {pipeline_mode = #tpu.pipeline_mode<synchronous>, transform_indices = @transform_1, window_bounds = array<i64: 32, 1>}, {pipeline_mode = #tpu.pipeline_mode<synchronous>, transform_indices = @transform_2, window_bounds = array<i64: 32, 1>}, {pipeline_mode = #tpu.pipeline_mode<synchronous>, transform_indices = @transform_3, window_bounds = array<i64: 32, 32>}, {pipeline_mode = #tpu.pipeline_mode<synchronous>, transform_indices = @transform_4, window_bounds = array<i64: 32, 1>}, {pipeline_mode = #tpu.pipeline_mode<synchronous>, transform_indices = @transform_5, window_bounds = array<i64: 8, 32>}, {pipeline_mode = #tpu.pipeline_mode<synchronous>, transform_indices = @transform_6, window_bounds = array<i64: 8, 1>}, {transform_indices = @transform_7, window_bounds = array<i64: 8, 128>}]} {
    %c0 = arith.constant 0 : index
    %c0_0 = arith.constant 0 : index
    %0 = vector.load %arg1[%c0, %c0_0] : memref<1x128xf32, #tpu.memory_space<vmem>>, vector<1x128xf32>
    %c0_1 = arith.constant 0 : index
    %c0_2 = arith.constant 0 : index
    %1 = vector.load %arg2[%c0_1, %c0_2] : memref<32x1xf32, #tpu.memory_space<vmem>>, vector<32x1xf32>
    %c0_3 = arith.constant 0 : index
    %c0_4 = arith.constant 0 : index
    %2 = vector.load %arg3[%c0_3, %c0_4] : memref<32x1xf32, #tpu.memory_space<vmem>>, vector<32x1xf32>
    %3 = vector.broadcast %1 : vector<32x1xf32> to vector<32x128xf32>
    %4 = vector.broadcast %0 : vector<1x128xf32> to vector<32x128xf32>
    %5 = arith.mulf %3, %4 : vector<32x128xf32>
    %6 = vector.broadcast %2 : vector<32x1xf32> to vector<32x128xf32>
    %7 = arith.addf %5, %6 : vector<32x128xf32>
    %8 = arith.negf %7 : vector<32x128xf32>
    %9 = math.exp %8 : vector<32x128xf32>
    %cst = arith.constant 1.000000e+00 : f32
    %10 = vector.broadcast %cst : f32 to vector<32x128xf32>
    %11 = arith.addf %10, %9 : vector<32x128xf32>
    %12 = arith.divf %10, %11 : vector<32x128xf32>
    %13 = arith.mulf %7, %12 : vector<32x128xf32>
    %c0_5 = arith.constant 0 : index
    %c0_6 = arith.constant 0 : index
    %14 = vector.load %arg4[%c0_5, %c0_6] : memref<32x32xf32, #tpu.memory_space<vmem>>, vector<32x32xf32>
    %c0_7 = arith.constant 0 : index
    %c0_8 = arith.constant 0 : index
    %15 = vector.load %arg5[%c0_7, %c0_8] : memref<32x1xf32, #tpu.memory_space<vmem>>, vector<32x1xf32>
    %cst_9 = arith.constant dense<0.000000e+00> : vector<32x128xf32>
    %16 = tpu.matmul %14, %13, %cst_9 {dimension_numbers = #tpu.dot_dimension_numbers<[1], [0], [0], [1], [0, 0, 1, 1], [], []>} : vector<32x32xf32>, vector<32x128xf32>, vector<32x128xf32> -> vector<32x128xf32>
    %17 = vector.broadcast %15 : vector<32x1xf32> to vector<32x128xf32>
    %18 = arith.addf %16, %17 : vector<32x128xf32>
    %19 = arith.negf %18 : vector<32x128xf32>
    %20 = math.exp %19 : vector<32x128xf32>
    %cst_10 = arith.constant 1.000000e+00 : f32
    %21 = vector.broadcast %cst_10 : f32 to vector<32x128xf32>
    %22 = arith.addf %21, %20 : vector<32x128xf32>
    %23 = arith.divf %21, %22 : vector<32x128xf32>
    %24 = arith.mulf %18, %23 : vector<32x128xf32>
    %c0_11 = arith.constant 0 : index
    %c0_12 = arith.constant 0 : index
    %25 = vector.load %arg6[%c0_11, %c0_12] : memref<8x32xf32, #tpu.memory_space<vmem>>, vector<8x32xf32>
    %c0_13 = arith.constant 0 : index
    %c0_14 = arith.constant 0 : index
    %26 = vector.load %arg7[%c0_13, %c0_14] : memref<8x1xf32, #tpu.memory_space<vmem>>, vector<8x1xf32>
    %cst_15 = arith.constant dense<0.000000e+00> : vector<8x128xf32>
    %27 = tpu.matmul %25, %24, %cst_15 {dimension_numbers = #tpu.dot_dimension_numbers<[1], [0], [0], [1], [0, 0, 1, 1], [], []>} : vector<8x32xf32>, vector<32x128xf32>, vector<8x128xf32> -> vector<8x128xf32>
    %28 = vector.broadcast %26 : vector<8x1xf32> to vector<8x128xf32>
    %29 = arith.addf %27, %28 : vector<8x128xf32>
    %c0_16 = arith.constant 0 : index
    %c0_17 = arith.constant 0 : index
    %30 = vector.load %arg8[%c0_16, %c0_17] : memref<8x128xf32, #tpu.memory_space<vmem>>, vector<8x128xf32>
    tpu.vector_store %arg8[%c0_16, %c0_17], %29 {strides = array<i32>} : memref<8x128xf32, #tpu.memory_space<vmem>>, vector<8x128xf32>,
    return
  }
  func.func @transform_0(%arg0: i32) -> (i32, i32) {
    %c0_i32 = arith.constant 0 : i32
    %c0_i32_0 = arith.constant 0 : i32
    return %c0_i32, %arg0 : i32, i32
  }
  func.func @transform_1(%arg0: i32) -> (i32, i32) {
    %c0_i32 = arith.constant 0 : i32
    %c0_i32_0 = arith.constant 0 : i32
    %c0_i32_1 = arith.constant 0 : i32
    return %c0_i32, %c0_i32_0 : i32, i32
  }
  func.func @transform_2(%arg0: i32) -> (i32, i32) {
    %c0_i32 = arith.constant 0 : i32
    %c0_i32_0 = arith.constant 0 : i32
    %c0_i32_1 = arith.constant 0 : i32
    return %c0_i32, %c0_i32_0 : i32, i32
  }
  func.func @transform_3(%arg0: i32) -> (i32, i32) {
    %c0_i32 = arith.constant 0 : i32
    %c0_i32_0 = arith.constant 0 : i32
    %c0_i32_1 = arith.constant 0 : i32
    return %c0_i32, %c0_i32_0 : i32, i32
  }
  func.func @transform_4(%arg0: i32) -> (i32, i32) {
    %c0_i32 = arith.constant 0 : i32
    %c0_i32_0 = arith.constant 0 : i32
    %c0_i32_1 = arith.constant 0 : i32
    return %c0_i32, %c0_i32_0 : i32, i32
  }
  func.func @transform_5(%arg0: i32) -> (i32, i32) {
    %c0_i32 = arith.constant 0 : i32
    %c0_i32_0 = arith.constant 0 : i32
    %c0_i32_1 = arith.constant 0 : i32
    return %c0_i32, %c0_i32_0 : i32, i32
  }
  func.func @transform_6(%arg0: i32) -> (i32, i32) {
    %c0_i32 = arith.constant 0 : i32
    %c0_i32_0 = arith.constant 0 : i32
    %c0_i32_1 = arith.constant 0 : i32
    return %c0_i32, %c0_i32_0 : i32, i32
  }
  func.func @transform_7(%arg0: i32) -> (i32, i32) {
    %c0_i32 = arith.constant 0 : i32
    %c0_i32_0 = arith.constant 0 : i32
    return %c0_i32, %arg0 : i32, i32
  }
}

</mosaic_0001>

<bundles_post_ra>
// kernel: tpu_custom_call.1
= control target key start
LH: loop header
LB: loop body
LE: loop exit
PB: predicated region body
PF: predicated region fallthrough
CT: control target
= control target key end

     0   :  { %v449_v2 = vmov 0   ;;  %s614_s0 = inlined_call_operand.vmem [shape: f32[1,128], index: 0, kind: input, shape index: {}]   ;;  %s615_s1 = inlined_call_operand.vmem [shape: f32[32,1], index: 1, kind: input, shape index: {}]   ;;  %s616_s2 = inlined_call_operand.vmem [shape: f32[32,1], index: 2, kind: input, shape index: {}]   ;;  %s617_s3 = inlined_call_operand.vmem [shape: f32[32,32], index: 3, kind: input, shape index: {}]   ;;  %s618_s4 = inlined_call_operand.vmem [shape: f32[32,1], index: 4, kind: input, shape index: {}]   ;;  %s619_s5 = inlined_call_operand.vmem [shape: f32[8,32], index: 5, kind: input, shape index: {}]   ;;  %s620_s6 = inlined_call_operand.vmem [shape: f32[8,1], index: 6, kind: input, shape index: {}]   ;;  %s621_s7 = inlined_call_operand.hbm [shape: f32[8,128], index: 7, kind: output, shape index: {}]  }
   0x1   :  { %v35_v0 = vld [vmem:[%s616_s2 + $0x18] sm:$0xff]  ;;  %388 = vset.pattern.permute.xlu1 %v449_v2  ;;  %387 = vset.pattern.permute.xlu0 %v449_v2  ;;  %v34_v3 = vld [vmem:[%s616_s2 + $0x10] sm:$0xff] }
   0x2   :  { %v31_v1 = vld [vmem:[%s615_s1 + $0x18] sm:$0xff]  ;;  %80 = vperm.xlu1 %388, %v35_v0   ;;  %389 = vset.pattern.permute.xlu2 %v449_v2 }
   0x3   :  { %53 = vperm.xlu0 %387, %v31_v1   ;;  %75 = vperm.xlu2 %389, %v34_v3  }
   0x4   :  { %12 = vsyncpa [#allocation3], 0  ;;  %v30_v4 = vld [vmem:[%s615_s1 + $0x10] sm:$0xff]  ;;  %v29_v5 = vld [vmem:[%s615_s1 + $0x8] sm:$0xff]  ;;  %s450_s10 = smov [#allocation2]   ;;  %s355_s14 = sshll.u32 %s621_s7, 4  ;;  %s356_s14 = int_to_ptr.hbm [resolvable:$true] %s355_s14 }
   0x5   :  { %v28_v6 = vld [vmem:[%s615_s1] sm:$0xff]  ;;  %v33_v7 = vld [vmem:[%s616_s2 + $0x8] sm:$0xff]  ;;  %v174_v9 = vld [vmem:[%s618_s4 + $0x18] sm:$0xff]  ;;  %s353_s11 = sshll.u32 %s450_s10, 4  ;;  %s354_s11 = int_to_ptr.vmem [resolvable:$true] %s353_s11 }
   0x6   :  { %v32_v8 = vld [vmem:[%s616_s2] sm:$0xff]  ;;  %v173_v10 = vld [vmem:[%s618_s4 + $0x10] sm:$0xff]  ;;  %v172_v11 = vld [vmem:[%s618_s4 + $0x8] sm:$0xff] }
   0x7   :  { %v171_v12 = vld [vmem:[%s618_s4] sm:$0xff] }
   0x8   :  { %v318_v13 = vld [vmem:[%s620_s6] sm:$0xff] }
   0x9   :  { %v390_v14 = vld [vmem:[%s614_s0] ss:$0 sm:$0xff] }
   0xa   :  { %43 = vperm.xlu1 %388, %v29_v5  }
   0xb   :  { %48 = vperm.xlu0 %387, %v30_v4   ;;  %38 = vperm.xlu2 %389, %v28_v6  }
  0x12   :  { %65 = vperm.xlu1 %388, %v32_v8  }
  0x13   :  { %70 = vperm.xlu0 %387, %v33_v7   ;;  %192 = vperm.xlu2 %389, %v174_v9  }
  0x1a   :  { %182 = vperm.xlu1 %388, %v172_v11  }
  0x1b   :  { %187 = vperm.xlu0 %387, %v173_v10   ;;  %177 = vperm.xlu2 %389, %v171_v12  }
  0x23   :  { %321 = vperm.xlu0 %387, %v318_v13  }
  0x5d   :  { %v76_v19 = vpop.permute.xlu2 %75 }
  0x65   :  { %v39_v27 = vpop.permute.xlu2 %38 }
  0x66   :  { %v59_v29 = vmul.f32 %v390_v14, %v39_v27 }
  0x6d   :  { %v193_v27 = vpop.permute.xlu2 %192 }
  0x74   :  { %v81_v15 = vpop.permute.xlu1 %80 }
  0x75   :  { %v54_v16 = vpop.permute.xlu0 %53 }
  0x76   :  { %v62_v17 = vmul.f32 %v390_v14, %v54_v16 }
  0x78   :  { %v86_v18 = vadd.f32 %v81_v15, %v62_v17 }
  0x7a   :  { %v367_v20 = vmul.f32 -1.442695, %v86_v18 }
  0x7c   :  { %391 = vpow2.f32 %v367_v20  ;;  %v44_v22 = vpop.permute.xlu1 %43 }
  0x7d   :  { %v49_v21 = vpop.permute.xlu0 %48  ;;  %v60_v30 = vmul.f32 %v390_v14, %v44_v22 }
  0x7e   :  { %v61_v23 = vmul.f32 %v390_v14, %v49_v21 }
  0x80   :  { %v533_v24 = vadd.f32 %v76_v19, %v61_v23  ;;  %v167_v23 = vld [vmem:[%s617_s3] sm:$0xff] }
  0x82   :  { %v392_v25 = vpop.eup %391  ;;  %v366_v26 = vmul.f32 -1.442695, %v533_v24 }
  0x83   :  { %v102_v28 = vadd.f32 1.0, %v392_v25  ;;  %v169_v25 = vld [vmem:[%s617_s3 + $0x10] sm:$0xff] }
  0x84   :  { %393 = vpow2.f32 %v366_v26  ;;  %v66_v32 = vpop.permute.xlu1 %65  ;;  %v170_v26 = vld [vmem:[%s617_s3 + $0x18] sm:$0xff] }
  0x85   :  { %395 = vrcp.f32 %v102_v28  ;;  %v71_v31 = vpop.permute.xlu0 %70  ;;  %v538_v34 = vadd.f32 %v66_v32, %v59_v29  ;;  %v159_v44 = vand.u32 2147483648, %v102_v28  ;;  %v157_v47 = vand.u32 2147483647, %v102_v28 }
  0x86   :  { %v536_v33 = vadd.f32 %v71_v31, %v60_v30  ;;  %vm153_vm1 = vweird.f32 %v102_v28 }
  0x87   :  { %v364_v36 = vmul.f32 -1.442695, %v538_v34  ;;  %v160_v51 = vor.u32 1.1754944e-38, %v159_v44  ;;  %vm158_vm3 = vcmp.eq.f32.partialorder %v157_v47, 8.507059e+37 }
  0x88   :  { %v365_v35 = vmul.f32 -1.442695, %v536_v33 }
  0x8a   :  { %v394_v37 = vpop.eup %393  ;;  %397 = vpow2.f32 %v365_v35 }
  0x8b   :  { %v396_v38 = vpop.eup %395  ;;  %v101_v39 = vadd.f32 1.0, %v394_v37  ;;  %399 = vpow2.f32 %v364_v36 }
  0x8c   :  { %v149_v40 = vmul.f32 %v396_v38, %v102_v28  ;;  %vm154_vm0 = vweird.f32 %v396_v38  ;;  %v178_v28 = vpop.permute.xlu2 %177 }
  0x8d   :  { %401 = vrcp.f32 %v101_v39  ;;  %vm155_vm2 = vmor %vm153_vm1, %vm154_vm0  ;;  %v142_v57 = vand.u32 2147483647, %v101_v39  ;;  %v144_v58 = vand.u32 2147483648, %v101_v39  ;;  %vm138_vm5 = vweird.f32 %v101_v39  ;;  %v188_v32 = vpop.permute.xlu0 %187 }
  0x8e   :  { %v150_v41 = vsub.f32 1.0, %v149_v40  ;;  %vm195_vm0 = vcmask 261120  }
  0x8f   :  { %vm143_vm7 = vcmp.eq.f32.partialorder %v142_v57, 8.507059e+37  ;;  %v145_v2 = vor.u32 1.1754944e-38, %v144_v58 }
  0x90   :  { %v398_v42 = vpop.eup %397  ;;  %v151_v43 = vmul.f32 %v396_v38, %v150_v41 }
  0x91   :  { %v400_v45 = vpop.eup %399  ;;  %v100_v46 = vadd.f32 1.0, %v398_v42 }
  0x92   :  { %v99_v48 = vadd.f32 1.0, %v400_v45  ;;  %v152_v49 = vadd.f32 %v396_v38, %v151_v43 }
  0x93   :  { %v402_v50 = vpop.eup %401  ;;  %403 = vrcp.f32 %v100_v46  ;;  %v127_v3 = vand.u32 2147483647, %v100_v46  ;;  %v129_v4 = vand.u32 2147483648, %v100_v46  ;;  %vm123_vm10 = vweird.f32 %v100_v46 }
  0x94   :  { %405 = vrcp.f32 %v99_v48  ;;  %v156_v52 = vsel %vm155_vm2, %v396_v38, %v152_v49  ;;  %v134_v53 = vmul.f32 %v402_v50, %v101_v39  ;;  %vm139_vm4 = vweird.f32 %v402_v50 }
  0x95   :  { %v161_v54 = vsel %vm158_vm3, %v160_v51, %v156_v52  ;;  %vm140_vm6 = vmor %vm138_vm5, %vm139_vm4  ;;  %v114_v8 = vand.u32 2147483648, %v99_v48  ;;  %v112_v11 = vand.u32 2147483647, %v99_v48  ;;  %v130_v14 = vor.u32 1.1754944e-38, %v129_v4 }
  0x96   :  { %v166_v55 = vmul.f32 %v161_v54, %v86_v18  ;;  %v135_v56 = vsub.f32 1.0, %v134_v53  ;;  %vm108_vm12 = vweird.f32 %v99_v48  ;;  %vm128_vm13 = vcmp.eq.f32.partialorder %v127_v3, 8.507059e+37 }
  0x97   :  { %v115_v17 = vor.u32 1.1754944e-38, %v114_v8  ;;  %vm113_vm15 = vcmp.eq.f32.partialorder %v112_v11, 8.507059e+37 }
  0x98   :  { %220 = vmatpush.msra.mxu0 %v166_v55  ;;  %377 = vmatpush.msra.mxu2 %v166_v55  ;;  %v136_v60 = vmul.f32 %v402_v50, %v135_v56 }
  0x99   :  { %v404_v59 = vpop.eup %403  ;;  %378 = vmatpush.msra.mxu3 %v166_v55 }
  0x9a   :  { %v406_v61 = vpop.eup %405  ;;  %v119_v62 = vmul.f32 %v404_v59, %v100_v46  ;;  %v137_v0 = vadd.f32 %v402_v50, %v136_v60  ;;  %vm124_vm8 = vweird.f32 %v404_v59 }
  0x9b   :  { %v104_v63 = vmul.f32 %v406_v61, %v99_v48  ;;  %vm109_vm9 = vweird.f32 %v406_v61  ;;  %vm125_vm11 = vmor %vm123_vm10, %vm124_vm8 }
  0x9c   :  { %v120_v1 = vsub.f32 1.0, %v119_v62  ;;  %v141_v6 = vsel %vm140_vm6, %v402_v50, %v137_v0  ;;  %vm110_vm14 = vmor %vm108_vm12, %vm109_vm9 }
  0x9d   :  { %v105_v5 = vsub.f32 1.0, %v104_v63  ;;  %v146_v9 = vsel %vm143_vm7, %v145_v2, %v141_v6 }
  0x9e   :  { %v121_v7 = vmul.f32 %v404_v59, %v120_v1  ;;  %v165_v12 = vmul.f32 %v146_v9, %v533_v24  ;;  %v168_v24 = vld [vmem:[%s617_s3 + $0x8] sm:$0xff] }
  0x9f   :  { %v106_v10 = vmul.f32 %v406_v61, %v105_v5 }
  0xa0   :  { %v122_v13 = vadd.f32 %v404_v59, %v121_v7  ;;  %221 = vmatpush.msra.mxu0 %v165_v12  ;;  %379 = vmatpush.msra.mxu2 %v165_v12 }
  0xa1   :  { %v107_v15 = vadd.f32 %v406_v61, %v106_v10  ;;  %380 = vmatpush.msra.mxu3 %v165_v12 }
  0xa2   :  { %v126_v16 = vsel %vm125_vm11, %v404_v59, %v122_v13 }
  0xa3   :  { %v131_v18 = vsel %vm128_vm13, %v130_v14, %v126_v16  ;;  %v111_v19 = vsel %vm110_vm14, %v406_v61, %v107_v15 }
  0xa4   :  { %v164_v20 = vmul.f32 %v131_v18, %v536_v33  ;;  %v116_v21 = vsel %vm113_vm15, %v115_v17, %v111_v19  ;;  %v183_v33 = vpop.permute.xlu1 %182 }
  0xa5   :  { %v163_v22 = vmul.f32 %v116_v21, %v538_v34 }
  0xa6   :  { %222 = vmatpush.msra.mxu0 %v164_v20  ;;  %381 = vmatpush.msra.mxu2 %v164_v20 }
  0xa7   :  { %382 = vmatpush.msra.mxu3 %v164_v20 }
  0xa8   :  { %223 = vmatpush.msra.mxu0 %v163_v22  ;;  %383 = vmatpush.msra.mxu2 %v163_v22 }
  0xa9   :  { %384 = vmatpush.msra.mxu3 %v163_v22  ;;  %368 = vmatmul.msk.f32.vlgmr.msra.gmra.mxu0 %vm195_vm0, %v167_v23 }
  0xaa   :  { %369 = vmatmul.msk.f32.vlgmr.msra.gmra.mxu2 %vm195_vm0, %v168_v24  ;;  %370 = vmatmul.msk.f32.vlgmr.msra.gmra.mxu3 %vm195_vm0, %v169_v25 }
  0xb2   :  { %371 = vmatmul.msk.f32.gmra.mxu3 %vm195_vm0, %v170_v26 }
 0x126   :  { %v225_v29 = vpop.f32.mrf.mxu0 }
 0x127   :  { %v561_v30 = vadd.f32 %v225_v29, %v178_v28 }
 0x129   :  { %v372_v31 = vmul.f32 -1.442695, %v561_v30 }
 0x12b   :  { %407 = vpow2.f32 %v372_v31 }
 0x12d   :  { %v228_v34 = vpop.f32.mrf.mxu2  ;;  %v231_v35 = vpop.f32.mrf.mxu3 }
 0x12e   :  { %v564_v36 = vadd.f32 %v228_v34, %v183_v33  ;;  %v566_v37 = vadd.f32 %v231_v35, %v188_v32  ;;  %v317_v34 = vld [vmem:[%s619_s5] sm:$0xff]  ;;  %v322_v35 = vpop.permute.xlu0 %321 }
 0x130   :  { %v373_v38 = vmul.f32 -1.442695, %v564_v36  ;;  %v374_v39 = vmul.f32 -1.442695, %v566_v37 }
 0x131   :  { %v408_v40 = vpop.eup %407 }
 0x132   :  { %409 = vpow2.f32 %v373_v38  ;;  %v570_v41 = vadd.f32 1.0, %v408_v40 }
 0x133   :  { %411 = vpow2.f32 %v374_v39 }
 0x134   :  { %413 = vrcp.f32 %v570_v41  ;;  %vm258_vm2 = vweird.f32 %v570_v41  ;;  %v262_v18 = vand.u32 2147483647, %v570_v41  ;;  %v264_v19 = vand.u32 2147483648, %v570_v41 }
 0x135   :  { %v234_v42 = vpop.f32.mrf.mxu3 }
 0x136   :  { %v572_v43 = vadd.f32 %v234_v42, %v193_v27  ;;  %v265_v28 = vor.u32 1.1754944e-38, %v264_v19 }
 0x138   :  { %v410_v44 = vpop.eup %409  ;;  %v375_v45 = vmul.f32 -1.442695, %v572_v43 }
 0x139   :  { %v412_v46 = vpop.eup %411  ;;  %v250_v47 = vadd.f32 1.0, %v410_v44 }
 0x13a   :  { %v251_v48 = vadd.f32 1.0, %v412_v46  ;;  %415 = vpow2.f32 %v375_v45  ;;  %v576_v49 = vpop.eup %413 }
 0x13b   :  { %417 = vrcp.f32 %v250_v47  ;;  %v254_v56 = vmul.f32 %v576_v49, %v570_v41  ;;  %vm273_vm7 = vweird.f32 %v250_v47  ;;  %v277_v10 = vand.u32 2147483647, %v250_v47 }
 0x13c   :  { %419 = vrcp.f32 %v251_v48  ;;  %vm288_vm1 = vweird.f32 %v251_v48  ;;  %v292_v4 = vand.u32 2147483647, %v251_v48  ;;  %v294_v5 = vand.u32 2147483648, %v251_v48 }
 0x13d   :  { %v255_v60 = vsub.f32 1.0, %v254_v56  ;;  %v279_v11 = vand.u32 2147483648, %v250_v47  ;;  %vm259_vm8 = vweird.f32 %v576_v49  ;;  %vm278_vm15 = vcmp.eq.f32.partialorder %v277_v10, 8.507059e+37 }
 0x13e   :  { %v295_v17 = vor.u32 1.1754944e-38, %v294_v5  ;;  %vm293_vm13 = vcmp.eq.f32.partialorder %v292_v4, 8.507059e+37  ;;  %vm260_vm14 = vmor %vm258_vm2, %vm259_vm8 }
 0x13f   :  { %v256_v2 = vmul.f32 %v576_v49, %v255_v60  ;;  %v280_v24 = vor.u32 1.1754944e-38, %v279_v11 }
 0x140   :  { %v416_v50 = vpop.eup %415 }
 0x141   :  { %v418_v51 = vpop.eup %417  ;;  %v252_v52 = vadd.f32 1.0, %v416_v50  ;;  %v257_v15 = vadd.f32 %v576_v49, %v256_v2 }
 0x142   :  { %v420_v53 = vpop.eup %419  ;;  %v269_v54 = vmul.f32 %v418_v51, %v250_v47  ;;  %vm274_vm4 = vweird.f32 %v418_v51 }
 0x143   :  { %421 = vrcp.f32 %v252_v52  ;;  %v284_v55 = vmul.f32 %v420_v53, %v251_v48  ;;  %vm289_vm3 = vweird.f32 %v420_v53  ;;  %v309_v3 = vand.u32 2147483648, %v252_v52  ;;  %vm589_vm10 = vmor %vm273_vm7, %vm274_vm4 }
 0x144   :  { %v270_v58 = vsub.f32 1.0, %v269_v54  ;;  %v307_v7 = vand.u32 2147483647, %v252_v52  ;;  %vm582_vm6 = vmor %vm288_vm1, %vm289_vm3  ;;  %vm303_vm9 = vweird.f32 %v252_v52  ;;  %v261_v26 = vsel %vm260_vm14, %v576_v49, %v257_v15 }
 0x145   :  { %v285_v57 = vsub.f32 1.0, %v284_v55  ;;  %v310_v16 = vor.u32 1.1754944e-38, %v309_v3  ;;  %vm263_vm1 = vcmp.eq.f32.partialorder %v262_v18, 8.507059e+37 }
 0x146   :  { %v271_v63 = vmul.f32 %v418_v51, %v270_v58  ;;  %vm308_vm12 = vcmp.eq.f32.partialorder %v307_v7, 8.507059e+37  ;;  %v266_v31 = vsel %vm263_vm1, %v265_v28, %v261_v26 }
 0x147   :  { %v286_v59 = vmul.f32 %v420_v53, %v285_v57  ;;  %v313_v33 = vmul.f32 %v266_v31, %v561_v30 }
 0x148   :  { %v272_v8 = vadd.f32 %v418_v51, %v271_v63 }
 0x149   :  { %v422_v61 = vpop.eup %421  ;;  %v287_v1 = vadd.f32 %v420_v53, %v286_v59 }
 0x14a   :  { %v299_v62 = vmul.f32 %v422_v61, %v252_v52  ;;  %vm304_vm5 = vweird.f32 %v422_v61  ;;  %v276_v21 = vsel %vm589_vm10, %v418_v51, %v272_v8 }
 0x14b   :  { %v291_v13 = vsel %vm582_vm6, %v420_v53, %v287_v1  ;;  %vm305_vm11 = vmor %vm303_vm9, %vm304_vm5  ;;  %v281_v27 = vsel %vm278_vm15, %v280_v24, %v276_v21 }
 0x14c   :  { %v300_v0 = vsub.f32 1.0, %v299_v62  ;;  %v296_v23 = vsel %vm293_vm13, %v295_v17, %v291_v13  ;;  %v314_v32 = vmul.f32 %v281_v27, %v564_v36 }
 0x14d   :  { %v315_v29 = vmul.f32 %v296_v23, %v566_v37 }
 0x14e   :  { %v301_v6 = vmul.f32 %v422_v61, %v300_v0 }
 0x150   :  { %v302_v12 = vadd.f32 %v422_v61, %v301_v6 }
 0x152   :  { %v306_v20 = vsel %vm305_vm11, %v422_v61, %v302_v12 }
 0x153   :  { %v311_v22 = vsel %vm308_vm12, %v310_v16, %v306_v20 }
 0x154   :  { %v316_v25 = vmul.f32 %v311_v22, %v572_v43 }
 0x156   :  { %339 = vmatpush.msra.mxu1 %v316_v25 }
 0x158   :  { %340 = vmatpush.msra.mxu1 %v315_v29 }
 0x15a   :  { %341 = vmatpush.msra.mxu1 %v314_v32 }
 0x15c   :  { %342 = vmatpush.msra.mxu1 %v313_v33 }
 0x15d   :  { %376 = vmatmul.msk.f32.vlgmr.msra.gmra.mxu1 %vm195_vm0, %v317_v34 }
 0x1da   :  { %v344_v37 = vpop.f32.mrf.mxu1 }
 0x1db   :  { %v345_v38 = vadd.f32 %v344_v37, %v322_v35 }
 0x1dd   :  { %347 = vst [vmem:[#allocation2] sm:$0xff] %v345_v38 }
 0x1de   :  { %358 = dma.vmem_to_hbm [thread:$0]  %s354_s11, 128, %s356_s14, [#allocation3]  }
 0x1df   :  { %447 = dma.done.wait [#allocation3], 128  }
 0x1e0   :  { %448 = vsyncadd [#allocation3], 4294967168 }
 0x1e1   :  { %363 = vsyncpa [#allocation3], 1 }

</bundles_post_ra>
